<compile_context>
chip_gen: v7x
topology: tpu7x:2x2x1
jax: 0.10.0
libtpu: 0.0.40
codegen_flags: <defaults>
</compile_context>

<pallas_src>
import functools

import jax
import jax.numpy as jnp
from jax.experimental import pallas as pl
from jax.experimental.pallas import tpu as pltpu

_LANE = 128
_SUB = 8
_NEG_MASK = -1e30  # padded logits -> exp() == 0 exactly, no inf arithmetic


def _round_up(n, m):
    return (n + m - 1) // m * m


def _num_tensorcores():
    # v7x has 2 TensorCores per chip; v5e/v6e (and interpret mode) have 1.
    try:
        kind = jax.devices()[0].device_kind.lower()
        if "v7" in kind:
            return 2
    except Exception:
        pass
    return 1


def policy_kernel(x_ref, w_ref, b_ref, out_ref, *, f_pad, w_pad):
    """Fused fc1+relu -> fc2+relu -> fc3 -> softmax on one (TB, ...) batch tile.

    x_ref:   (TB, f_pad)              bf16   streamed batch tile
    w_ref:   (f_pad + 2*w_pad, w_pad) bf16   [w1 ; w2 ; w3] packed along rows
    b_ref:   (3, w_pad)               f32    [b1 ; b2 ; b3(mask-padded)]
    out_ref: (TB, w_pad)              f32    lane-dense padded probabilities
    """
    x = x_ref[...]
    w1 = w_ref[0:f_pad, :]
    w2 = w_ref[f_pad:f_pad + w_pad, :]
    w3 = w_ref[f_pad + w_pad:f_pad + 2 * w_pad, :]

    # fc1 + relu   (dropout == identity in eval mode)
    h1 = jnp.dot(x, w1, preferred_element_type=jnp.float32) + b_ref[0:1, :]
    h1 = jnp.maximum(h1, 0.0)

    # fc2 + relu   (dropout == identity in eval mode)
    h2 = jnp.dot(h1.astype(w2.dtype), w2,
                 preferred_element_type=jnp.float32) + b_ref[1:2, :]
    h2 = jnp.maximum(h2, 0.0)

    # action logits; padded columns carry a -1e30 bias so they vanish in softmax
    logits = jnp.dot(h2.astype(w3.dtype), w3,
                     preferred_element_type=jnp.float32) + b_ref[2:3, :]

    # numerically stable softmax over the lane axis; exact division so every
    # row sums to 1 (approx EUP reciprocal is not accurate enough for that).
    m = jnp.max(logits, axis=-1, keepdims=True)
    e = jnp.exp(logits - m)
    denom = jnp.sum(e, axis=-1, keepdims=True)
    out_ref[...] = (e / denom).astype(out_ref.dtype)


def pack_params(w1, b1, w2, b2, w3, b3):
    """One-time host-side packing: pad to lane-dense tiles, pack into 2 arrays.

    Returns (w_pack bf16 (Fp+2W, W), b_pack f32 (3, W)). Do this ONCE, outside
    the per-step hot path.
    """
    F, H = w1.shape
    H2, A = w2.shape[1], w3.shape[1]
    assert w2.shape[0] == H and w3.shape[0] == H2

    Fp = _round_up(F, _LANE)                 # lane-dense x tile / fc1 contraction
    W = _round_up(max(H, H2, A), _LANE)      # keep at 128 even on 256-wide MXUs

    def pad2(a, shape, fill=0.0):
        out = jnp.full(shape, fill, a.dtype)
        return out.at[: a.shape[0], : a.shape[1]].set(a)

    b1 = jnp.reshape(b1, (1, -1))
    b2 = jnp.reshape(b2, (1, -1))
    b3 = jnp.reshape(b3, (1, -1))

    w_pack = jnp.concatenate(
        [pad2(w1, (Fp, W)), pad2(w2, (W, W)), pad2(w3, (W, W))], axis=0
    ).astype(jnp.bfloat16)                                   # (Fp + 2W, W)
    b_pack = jnp.concatenate(
        [pad2(b1, (1, W)), pad2(b2, (1, W)), pad2(b3, (1, W), fill=_NEG_MASK)],
        axis=0,
    ).astype(jnp.float32)                                    # (3, W)
    return w_pack, b_pack


@functools.partial(jax.jit, static_argnames=("num_actions", "block_b", "num_tc"))
def policy_forward_packed(x, w_pack, b_pack, *, num_actions, block_b=256,
                          num_tc=1):
    """x: (B, F) f32. w_pack/b_pack: from pack_params. Returns (B, A) f32."""
    B, F = x.shape
    W = w_pack.shape[1]
    Fp = w_pack.shape[0] - 2 * W

    # Batch tiling: cap per-step rows at block_b (vreg pressure, not VMEM);
    # one grid step on single-TC chips, >= num_tc steps on v7x so both
    # TensorCores get a tile.
    TB = min(block_b, _round_up(B, _SUB))
    if num_tc >= 2 and B > _SUB:
        TB = min(TB, _round_up(pl.cdiv(B, num_tc), _SUB))
    Bp = _round_up(B, TB)

    if Bp == B and Fp == F and x.dtype == jnp.bfloat16:
        x_pad = x                                            # already aligned
    else:
        x_pad = jnp.zeros((Bp, Fp), jnp.bfloat16).at[:B, :F].set(
            x.astype(jnp.bfloat16))

    flops = 2 * Bp * (Fp * W + 2 * W * W)
    bytes_accessed = (x_pad.size * 2 + w_pack.size * 2 + b_pack.size * 4
                      + Bp * W * 4)

    out = pl.pallas_call(
        functools.partial(policy_kernel, f_pad=Fp, w_pad=W),
        out_shape=jax.ShapeDtypeStruct((Bp, W), jnp.float32),
        grid=(Bp // TB,),
        in_specs=[
            pl.BlockSpec((TB, Fp), lambda i: (i, 0)),         # streamed batch tile
            pl.BlockSpec((Fp + 2 * W, W), lambda i: (0, 0)),  # resident packed weights
            pl.BlockSpec((3, W), lambda i: (0, 0)),           # resident packed biases
        ],
        out_specs=pl.BlockSpec((TB, W), lambda i: (i, 0)),
        compiler_params=pltpu.CompilerParams(
            dimension_semantics=("parallel",),
        ),
        cost_estimate=pl.CostEstimate(
            flops=flops,
            transcendentals=Bp * W,
            bytes_accessed=bytes_accessed,
        ),
    )(x_pad, w_pack, b_pack)

    return out[:B, :num_actions]


def init_params(key, num_features, num_actions, hidden_size):
    """Deterministic synthetic init mimicking nn.Linear's uniform fan-in init."""
    h2 = hidden_size // 2
    ks = jax.random.split(key, 6)

    def linear(kw, kb, fan_in, fan_out):
        bound = 1.0 / jnp.sqrt(jnp.float32(fan_in))
        w = jax.random.uniform(kw, (fan_in, fan_out), jnp.float32, -bound, bound)
        b = jax.random.uniform(kb, (1, fan_out), jnp.float32, -bound, bound)
        return w, b

    w1, b1 = linear(ks[0], ks[1], num_features, hidden_size)
    w2, b2 = linear(ks[2], ks[3], hidden_size, h2)
    w3, b3 = linear(ks[4], ks[5], h2, num_actions)
    return w1, b1, w2, b2, w3, b3


if __name__ == "__main__":
    num_features = 16   # factors.shape[1] + 1  (synthetic small size)
    num_actions = 8     # fixed_shrk_data.shape[1] - 2 (synthetic small size)
    hidden_size = 32
    batch = 256

    key = jax.random.PRNGKey(0)
    kx, kp = jax.random.split(key)

    x = jax.random.normal(kx, (batch, num_features), dtype=jnp.float32)
    w1, b1, w2, b2, w3, b3 = init_params(kp, num_features, num_actions, hidden_size)

    # One-time parameter packing hoisted out of the hot path.
    w_pack, b_pack = jax.block_until_ready(pack_params(w1, b1, w2, b2, w3, b3))

    forward = functools.partial(policy_forward_packed,
                                num_actions=num_actions,
                                block_b=256,
                                num_tc=_num_tensorcores())

    probs = jax.block_until_ready(forward(x, w_pack, b_pack))

    # Reference in plain JAX (eval-mode dropout == identity), mirroring the
    # kernel's bf16 matmul inputs with f32 accumulation.
    bf = lambda a: a.astype(jnp.bfloat16).astype(jnp.float32)
    h1 = jnp.maximum(bf(x) @ bf(w1) + b1, 0.0)
    h2 = jnp.maximum(bf(h1) @ bf(w2) + b2, 0.0)
    logits = bf(h2) @ bf(w3) + b3
    ref = jax.nn.softmax(logits, axis=-1)

    assert probs.shape == (batch, num_actions)
    # Tolerance relaxed for bf16 matmul inputs.
    assert jnp.allclose(probs, ref, atol=2e-3, rtol=2e-2), \
        float(jnp.max(jnp.abs(probs - ref)))
    # Exact softmax division -> rows sum to 1 up to f32 rounding.
    assert jnp.allclose(jnp.sum(probs, axis=-1), 1.0, atol=1e-4)

    print("KERNEL_OK")
</pallas_src>

<mosaic_0001>
module attributes {stable_mosaic.version = 11 : i64} {
  func.func @policy_kernel(%arg0: i32, %arg1: memref<256x128xbf16, #tpu.memory_space<vmem>>, %arg2: memref<384x128xbf16, #tpu.memory_space<vmem>>, %arg3: memref<3x128xf32, #tpu.memory_space<vmem>>, %arg4: memref<256x128xf32, #tpu.memory_space<vmem>>) attributes {dimension_semantics = [#tpu.dimension_semantics<parallel>], iteration_bounds = array<i64: 1>, scalar_prefetch = 0 : i64, scratch_operands = 0 : i64, tpu.core_type = #tpu.core_type<tc>, window_params = [{transform_indices = @transform_0, window_bounds = array<i64: 256, 128>}, {pipeline_mode = #tpu.pipeline_mode<synchronous>, transform_indices = @transform_1, window_bounds = array<i64: 384, 128>}, {pipeline_mode = #tpu.pipeline_mode<synchronous>, transform_indices = @transform_2, window_bounds = array<i64: 3, 128>}, {transform_indices = @transform_3, window_bounds = array<i64: 256, 128>}]} {
    %c0 = arith.constant 0 : index
    %c0_0 = arith.constant 0 : index
    %0 = vector.load %arg1[%c0, %c0_0] : memref<256x128xbf16, #tpu.memory_space<vmem>>, vector<256x128xbf16>
    %c0_1 = arith.constant 0 : index
    %c0_2 = arith.constant 0 : index
    %1 = vector.load %arg2[%c0_1, %c0_2] : memref<384x128xbf16, #tpu.memory_space<vmem>>, vector<128x128xbf16>
    %c128 = arith.constant 128 : index
    %c0_3 = arith.constant 0 : index
    %2 = vector.load %arg2[%c128, %c0_3] : memref<384x128xbf16, #tpu.memory_space<vmem>>, vector<128x128xbf16>
    %c256 = arith.constant 256 : index
    %c0_4 = arith.constant 0 : index
    %3 = vector.load %arg2[%c256, %c0_4] : memref<384x128xbf16, #tpu.memory_space<vmem>>, vector<128x128xbf16>
    %cst = arith.constant dense<0.000000e+00> : vector<256x128xf32>
    %4 = tpu.matmul %0, %1, %cst {dimension_numbers = #tpu.dot_dimension_numbers<[1], [0], [0], [1], [0, 0, 1, 1], [], []>} : vector<256x128xbf16>, vector<128x128xbf16>, vector<256x128xf32> -> vector<256x128xf32>
    %c0_5 = arith.constant 0 : index
    %c0_6 = arith.constant 0 : index
    %5 = vector.load %arg3[%c0_5, %c0_6] : memref<3x128xf32, #tpu.memory_space<vmem>>, vector<1x128xf32>
    %6 = vector.broadcast %5 : vector<1x128xf32> to vector<256x128xf32>
    %7 = arith.addf %4, %6 : vector<256x128xf32>
    %cst_7 = arith.constant 0.000000e+00 : f32
    %8 = vector.broadcast %cst_7 : f32 to vector<256x128xf32>
    %9 = arith.maximumf %7, %8 : vector<256x128xf32>
    %10 = arith.truncf %9 : vector<256x128xf32> to vector<256x128xbf16>
    %cst_8 = arith.constant dense<0.000000e+00> : vector<256x128xf32>
    %11 = tpu.matmul %10, %2, %cst_8 {dimension_numbers = #tpu.dot_dimension_numbers<[1], [0], [0], [1], [0, 0, 1, 1], [], []>} : vector<256x128xbf16>, vector<128x128xbf16>, vector<256x128xf32> -> vector<256x128xf32>
    %c1 = arith.constant 1 : index
    %c0_9 = arith.constant 0 : index
    %12 = vector.load %arg3[%c1, %c0_9] : memref<3x128xf32, #tpu.memory_space<vmem>>, vector<1x128xf32>
    %13 = vector.broadcast %12 : vector<1x128xf32> to vector<256x128xf32>
    %14 = arith.addf %11, %13 : vector<256x128xf32>
    %cst_10 = arith.constant 0.000000e+00 : f32
    %15 = vector.broadcast %cst_10 : f32 to vector<256x128xf32>
    %16 = arith.maximumf %14, %15 : vector<256x128xf32>
    %17 = arith.truncf %16 : vector<256x128xf32> to vector<256x128xbf16>
    %cst_11 = arith.constant dense<0.000000e+00> : vector<256x128xf32>
    %18 = tpu.matmul %17, %3, %cst_11 {dimension_numbers = #tpu.dot_dimension_numbers<[1], [0], [0], [1], [0, 0, 1, 1], [], []>} : vector<256x128xbf16>, vector<128x128xbf16>, vector<256x128xf32> -> vector<256x128xf32>
    %c2 = arith.constant 2 : index
    %c0_12 = arith.constant 0 : index
    %19 = vector.load %arg3[%c2, %c0_12] : memref<3x128xf32, #tpu.memory_space<vmem>>, vector<1x128xf32>
    %20 = vector.broadcast %19 : vector<1x128xf32> to vector<256x128xf32>
    %21 = arith.addf %18, %20 : vector<256x128xf32>
    %cst_13 = arith.constant dense<0xFF800000> : vector<256xf32>
    %22 = vector.multi_reduction <maximumf>, %21, %cst_13 [1] : vector<256x128xf32> to vector<256xf32>
    %23 = vector.shape_cast %22 : vector<256xf32> to vector<256x1xf32>
    %24 = vector.broadcast %23 : vector<256x1xf32> to vector<256x128xf32>
    %25 = arith.subf %21, %24 : vector<256x128xf32>
    %26 = math.exp %25 : vector<256x128xf32>
    %cst_14 = arith.constant dense<0.000000e+00> : vector<256xf32>
    %27 = vector.multi_reduction <add>, %26, %cst_14 [1] : vector<256x128xf32> to vector<256xf32>
    %28 = vector.shape_cast %27 : vector<256xf32> to vector<256x1xf32>
    %29 = vector.broadcast %28 : vector<256x1xf32> to vector<256x128xf32>
    %30 = arith.divf %26, %29 : vector<256x128xf32>
    %c0_15 = arith.constant 0 : index
    %c0_16 = arith.constant 0 : index
    %31 = vector.load %arg4[%c0_15, %c0_16] : memref<256x128xf32, #tpu.memory_space<vmem>>, vector<256x128xf32>
    tpu.vector_store %arg4[%c0_15, %c0_16], %30 {strides = array<i32>} : memref<256x128xf32, #tpu.memory_space<vmem>>, vector<256x128xf32>,
    return
  }
  func.func @transform_0(%arg0: i32) -> (i32, i32) {
    %c0_i32 = arith.constant 0 : i32
    %c0_i32_0 = arith.constant 0 : i32
    return %arg0, %c0_i32 : i32, i32
  }
  func.func @transform_1(%arg0: i32) -> (i32, i32) {
    %c0_i32 = arith.constant 0 : i32
    %c0_i32_0 = arith.constant 0 : i32
    %c0_i32_1 = arith.constant 0 : i32
    return %c0_i32, %c0_i32_0 : i32, i32
  }
  func.func @transform_2(%arg0: i32) -> (i32, i32) {
    %c0_i32 = arith.constant 0 : i32
    %c0_i32_0 = arith.constant 0 : i32
    %c0_i32_1 = arith.constant 0 : i32
    return %c0_i32, %c0_i32_0 : i32, i32
  }
  func.func @transform_3(%arg0: i32) -> (i32, i32) {
    %c0_i32 = arith.constant 0 : i32
    %c0_i32_0 = arith.constant 0 : i32
    return %arg0, %c0_i32 : i32, i32
  }
}

</mosaic_0001>

<bundles_post_ra>
// kernel: policy_forward_packed.1
= control target key start
LH: loop header
LB: loop body
LE: loop exit
PB: predicated region body
PF: predicated region fallthrough
CT: control target
= control target key end

     0   :  { %s2311_s1 = inlined_call_operand.vmem [shape: bf16[384,128], index: 1, kind: input, shape index: {}]   ;;  %s2312_s0 = inlined_call_operand.vmem [shape: bf16[256,128], index: 0, kind: input, shape index: {}]   ;;  %s2313_s2 = inlined_call_operand.vmem [shape: f32[3,128], index: 2, kind: input, shape index: {}]   ;;  %s2314_s3 = inlined_call_operand.vmem [shape: f32[256,128], index: 3, kind: output, shape index: {}]  }
   0x1   :  { %v1528_v0 = vld [vmem:[%s2311_s1] sm:$0xff]   ;;  %v1529_v1 = vld [vmem:[%s2311_s1 + $0x8] sm:$0xff]   ;;  %v1530_v2 = vld [vmem:[%s2311_s1 + $0x10] sm:$0xff]  }
   0x2   :  { %1368 = vmatprep.subr.bf16.mxu0 %v1528_v0  ;;  %1512 = vmatprep.subr.bf16.mxu1 %v1528_v0  ;;  %v1531_v3 = vld [vmem:[%s2311_s1 + $0x18] sm:$0xff]   ;;  %v1536_v4 = vld [vmem:[%s2312_s0] sm:$0xff]   ;;  %v1533_v6 = vld [vmem:[%s2311_s1 + $0x28] sm:$0xff]  }
   0x3   :  { %1369 = vmatpush3.bf16.msra.mxu0 %v1528_v0  ;;  %1520 = vmatpush3.bf16.msra.mxu1 %v1528_v0  ;;  %v1532_v5 = vld [vmem:[%s2311_s1 + $0x20] sm:$0xff]   ;;  %v1534_v8 = vld [vmem:[%s2311_s1 + $0x30] sm:$0xff]   ;;  %v1535_v9 = vld [vmem:[%s2311_s1 + $0x38] sm:$0xff]  }
   0x4   :  { %1370 = vmatprep.subr.bf16.mxu0 %v1529_v1  ;;  %1513 = vmatprep.subr.bf16.mxu1 %v1529_v1  ;;  %v1544_v7 = vld [vmem:[%s2312_s0 + $0x40] sm:$0xff]   ;;  %v1537_v10 = vld [vmem:[%s2312_s0 + $0x8] sm:$0xff]   ;;  %v1538_v13 = vld [vmem:[%s2312_s0 + $0x10] sm:$0xff]  }
   0x5   :  { %1384 = vmatprep.mubr.bf16.mxu0 %v1536_v4  ;;  %1400 = vmatprep.mubr.bf16.mxu1 %v1544_v7  ;;  %v1545_v11 = vld [vmem:[%s2312_s0 + $0x48] sm:$0xff]   ;;  %v1552_v12 = vld [vmem:[%s2311_s1 + $0x40] sm:$0xff]   ;;  %v1546_v14 = vld [vmem:[%s2312_s0 + $0x50] sm:$0xff]  }
   0x6   :  { %v1553_v15 = vld [vmem:[%s2311_s1 + $0x48] sm:$0xff]   ;;  %v1554_v16 = vld [vmem:[%s2311_s1 + $0x50] sm:$0xff]   ;;  %v1539_v17 = vld [vmem:[%s2312_s0 + $0x18] sm:$0xff]  }
   0x7   :  { %1371 = vmatpush3.bf16.msra.mxu0 %v1529_v1  ;;  %1521 = vmatpush3.bf16.msra.mxu1 %v1529_v1  ;;  %v1547_v18 = vld [vmem:[%s2312_s0 + $0x58] sm:$0xff]   ;;  %v1540_v19 = vld [vmem:[%s2312_s0 + $0x20] sm:$0xff]   ;;  %v1541_v23 = vld [vmem:[%s2312_s0 + $0x28] sm:$0xff]  }
   0x8   :  { %1372 = vmatprep.subr.bf16.mxu0 %v1530_v2  ;;  %1514 = vmatprep.subr.bf16.mxu1 %v1530_v2  ;;  %v1548_v20 = vld [vmem:[%s2312_s0 + $0x60] sm:$0xff]   ;;  %v1555_v21 = vld [vmem:[%s2311_s1 + $0x58] sm:$0xff]   ;;  %v1549_v24 = vld [vmem:[%s2312_s0 + $0x68] sm:$0xff]  }
   0x9   :  { %v1556_v22 = vld [vmem:[%s2311_s1 + $0x60] sm:$0xff]   ;;  %v1542_v25 = vld [vmem:[%s2312_s0 + $0x30] sm:$0xff]   ;;  %v1557_v27 = vld [vmem:[%s2311_s1 + $0x68] sm:$0xff]  }
   0xa   :  { %v1550_v26 = vld [vmem:[%s2312_s0 + $0x70] sm:$0xff]   ;;  %v1543_v28 = vld [vmem:[%s2312_s0 + $0x38] sm:$0xff]   ;;  %v1560_v32 = vld [vmem:[%s2311_s1 + $0x80] sm:$0xff]  }
   0xb   :  { %1373 = vmatpush3.bf16.msra.mxu0 %v1530_v2  ;;  %1522 = vmatpush3.bf16.msra.mxu1 %v1530_v2  ;;  %v1551_v29 = vld [vmem:[%s2312_s0 + $0x78] sm:$0xff]   ;;  %v1558_v30 = vld [vmem:[%s2311_s1 + $0x70] sm:$0xff]   ;;  %v1561_v33 = vld [vmem:[%s2311_s1 + $0x88] sm:$0xff]  }
   0xc   :  { %1374 = vmatprep.subr.bf16.mxu0 %v1531_v3  ;;  %1515 = vmatprep.subr.bf16.mxu1 %v1531_v3  ;;  %v1559_v31 = vld [vmem:[%s2311_s1 + $0x78] sm:$0xff]   ;;  %v1562_v34 = vld [vmem:[%s2311_s1 + $0x90] sm:$0xff]   ;;  %v1564_v36 = vld [vmem:[%s2311_s1 + $0xa0] sm:$0xff]  }
   0xd   :  { %v1563_v35 = vld [vmem:[%s2311_s1 + $0x98] sm:$0xff]   ;;  %v1565_v37 = vld [vmem:[%s2311_s1 + $0xa8] sm:$0xff]   ;;  %v1833_v38 = vld [vmem:[%s2313_s2] ss:$0 sm:$0xff] }
   0xf   :  { %1375 = vmatpush3.bf16.msra.mxu0 %v1531_v3  ;;  %1523 = vmatpush3.bf16.msra.mxu1 %v1531_v3 }
  0x10   :  { %1376 = vmatprep.subr.bf16.mxu0 %v1532_v5  ;;  %1516 = vmatprep.subr.bf16.mxu1 %v1532_v5 }
  0x13   :  { %1377 = vmatpush3.bf16.msra.mxu0 %v1532_v5  ;;  %1524 = vmatpush3.bf16.msra.mxu1 %v1532_v5 }
  0x14   :  { %1378 = vmatprep.subr.bf16.mxu0 %v1533_v6  ;;  %1517 = vmatprep.subr.bf16.mxu1 %v1533_v6 }
  0x17   :  { %1379 = vmatpush3.bf16.msra.mxu0 %v1533_v6  ;;  %1525 = vmatpush3.bf16.msra.mxu1 %v1533_v6 }
  0x18   :  { %1380 = vmatprep.subr.bf16.mxu0 %v1534_v8  ;;  %1518 = vmatprep.subr.bf16.mxu1 %v1534_v8 }
  0x1b   :  { %1381 = vmatpush3.bf16.msra.mxu0 %v1534_v8  ;;  %1526 = vmatpush3.bf16.msra.mxu1 %v1534_v8 }
  0x1c   :  { %1382 = vmatprep.subr.bf16.mxu0 %v1535_v9  ;;  %1519 = vmatprep.subr.bf16.mxu1 %v1535_v9 }
  0x1f   :  { %1383 = vmatpush3.bf16.msra.mxu0 %v1535_v9  ;;  %1527 = vmatpush3.bf16.msra.mxu1 %v1535_v9 }
  0x20   :  { %1416 = vmatprep.subr.bf16.mxu1 %v1552_v12  ;;  %1464 = vmatprep.subr.bf16.mxu0 %v1560_v32 }
  0x22   :  { %1385 = vmatmul.mubr.bf16.vlgmr.msra.gmra.mrb[0].mxu0 %v1537_v10  ;;  %1401 = vmatmul.mubr.bf16.vlgmr.msra.gmra.mrb[0].mxu1 %v1545_v11 }
  0x23   :  { %1388 = vmatprep.mubr.bf16.mxu0 %v1538_v13  ;;  %1404 = vmatprep.mubr.bf16.mxu1 %v1546_v14 }
  0x24   :  { %1417 = vmatpush3.bf16.msra.mxu1 %v1552_v12  ;;  %1465 = vmatpush3.bf16.msra.mxu0 %v1560_v32 }
  0x25   :  { %1418 = vmatprep.subr.bf16.mxu1 %v1553_v15  ;;  %1466 = vmatprep.subr.bf16.mxu0 %v1561_v33 }
  0x28   :  { %1419 = vmatpush3.bf16.msra.mxu1 %v1553_v15  ;;  %1467 = vmatpush3.bf16.msra.mxu0 %v1561_v33 }
  0x29   :  { %1420 = vmatprep.subr.bf16.mxu1 %v1554_v16  ;;  %1468 = vmatprep.subr.bf16.mxu0 %v1562_v34 }
  0x2a   :  { %1389 = vmatmul.mubr.bf16.gmra.mrb[4].mxu0 %v1539_v17  ;;  %1405 = vmatmul.mubr.bf16.gmra.mrb[4].mxu1 %v1547_v18 }
  0x2b   :  { %1392 = vmatprep.mubr.bf16.mxu0 %v1540_v19  ;;  %1408 = vmatprep.mubr.bf16.mxu1 %v1548_v20 }
  0x2c   :  { %1421 = vmatpush3.bf16.msra.mxu1 %v1554_v16  ;;  %1469 = vmatpush3.bf16.msra.mxu0 %v1562_v34 }
  0x2d   :  { %1422 = vmatprep.subr.bf16.mxu1 %v1555_v21  ;;  %1470 = vmatprep.subr.bf16.mxu0 %v1563_v35 }
  0x30   :  { %1423 = vmatpush3.bf16.msra.mxu1 %v1555_v21  ;;  %1471 = vmatpush3.bf16.msra.mxu0 %v1563_v35 }
  0x31   :  { %1424 = vmatprep.subr.bf16.mxu1 %v1556_v22  ;;  %1472 = vmatprep.subr.bf16.mxu0 %v1564_v36 }
  0x32   :  { %1393 = vmatmul.mubr.bf16.gmra.mrb[8].mxu0 %v1541_v23  ;;  %1409 = vmatmul.mubr.bf16.gmra.mrb[8].mxu1 %v1549_v24 }
  0x33   :  { %1396 = vmatprep.mubr.bf16.mxu0 %v1542_v25  ;;  %1412 = vmatprep.mubr.bf16.mxu1 %v1550_v26 }
  0x34   :  { %1425 = vmatpush3.bf16.msra.mxu1 %v1556_v22  ;;  %1473 = vmatpush3.bf16.msra.mxu0 %v1564_v36 }
  0x35   :  { %1426 = vmatprep.subr.bf16.mxu1 %v1557_v27  ;;  %1474 = vmatprep.subr.bf16.mxu0 %v1565_v37 }
  0x38   :  { %1427 = vmatpush3.bf16.msra.mxu1 %v1557_v27  ;;  %1475 = vmatpush3.bf16.msra.mxu0 %v1565_v37 }
  0x39   :  { %1428 = vmatprep.subr.bf16.mxu1 %v1558_v30 }
  0x3a   :  { %1397 = vmatmul.mubr.bf16.gmra.mrb[12].mxu0 %v1543_v28  ;;  %1413 = vmatmul.mubr.bf16.gmra.mrb[12].mxu1 %v1551_v29 }
  0x3c   :  { %1429 = vmatpush3.bf16.msra.mxu1 %v1558_v30 }
  0x3d   :  { %1430 = vmatprep.subr.bf16.mxu1 %v1559_v31 }
  0x40   :  { %1431 = vmatpush3.bf16.msra.mxu1 %v1559_v31 }
  0xf5   :  { %v1386_v39 = vpop.f32.mrb[0].mxu0  ;;  %v1402_v40 = vpop.f32.mrb[0].mxu1 }
  0xf6   :  { %v287_v41 = vadd.f32 %v1386_v39, %v1833_v38  ;;  %v278_v42 = vpop.f32.mrb[1].mxu0  ;;  %v351_v43 = vadd.f32 %v1402_v40, %v1833_v38  ;;  %v342_v44 = vpop.f32.mrb[1].mxu1 }
  0xf7   :  { %v279_v45 = vadd.f32 %v1833_v38, %v278_v42  ;;  %v1387_v46 = vpop.f32.mrb[2].mxu0  ;;  %v343_v47 = vadd.f32 %v1833_v38, %v342_v44  ;;  %v1403_v48 = vpop.f32.mrb[2].mxu1 }
  0xf8   :  { %v290_v49 = vadd.f32 %v1387_v46, %v1833_v38  ;;  %v281_v50 = vpop.f32.mrb[3].mxu0  ;;  %v423_v51 = vmax.f32 %v351_v43, 0.0  ;;  %v354_v52 = vadd.f32 %v1403_v48, %v1833_v38  ;;  %v345_v53 = vpop.f32.mrb[3].mxu1  ;;  %v407_v57 = vmax.f32 %v287_v41, 0.0 }
  0xf9   :  { %v282_v54 = vadd.f32 %v1833_v38, %v281_v50  ;;  %v421_v55 = vmax.f32 %v343_v47, 0.0  ;;  %v346_v56 = vadd.f32 %v1833_v38, %v345_v53  ;;  %v405_v60 = vmax.f32 %v279_v45, 0.0 }
  0xfa   :  { %v408_v58 = vmax.f32 %v290_v49, 0.0  ;;  %v424_v59 = vmax.f32 %v354_v52, 0.0 }
  0xfb   :  { %v406_v61 = vmax.f32 %v282_v54, 0.0  ;;  %v422_v62 = vmax.f32 %v346_v56, 0.0 }
  0xfc   :  { %v438_v63 = vpack.c.bf16 %v408_v58, %v407_v57  ;;  %v1843_v0 = vpack.c.bf16 %v424_v59, %v423_v51 }
  0xfd   :  { %v437_v1 = vpack.c.bf16 %v406_v61, %v405_v60  ;;  %v1390_v2 = vpop.f32.mrb[4].mxu0  ;;  %v1845_v3 = vpack.c.bf16 %v422_v62, %v421_v55  ;;  %v1406_v4 = vpop.f32.mrb[4].mxu1 }
  0xfe   :  { %v303_v5 = vadd.f32 %v1390_v2, %v1833_v38  ;;  %v294_v6 = vpop.f32.mrb[5].mxu0  ;;  %v367_v7 = vadd.f32 %v1406_v4, %v1833_v38  ;;  %v358_v8 = vpop.f32.mrb[5].mxu1 }
  0xff   :  { %v295_v9 = vadd.f32 %v1833_v38, %v294_v6  ;;  %v1391_v10 = vpop.f32.mrb[6].mxu0  ;;  %1432 = vmatprep.mubr.bf16.mxu1 %v437_v1  ;;  %v359_v11 = vadd.f32 %v1833_v38, %v358_v8  ;;  %v1407_v12 = vpop.f32.mrb[6].mxu1 }
 0x100   :  { %v411_v13 = vmax.f32 %v303_v5, 0.0  ;;  %v306_v14 = vadd.f32 %v1391_v10, %v1833_v38  ;;  %v297_v15 = vpop.f32.mrb[7].mxu0  ;;  %1433 = vmatmul.mubr.bf16.vlgmr.msra.gmra.mrb[16].mxu1 %v438_v63  ;;  %v427_v16 = vmax.f32 %v367_v7, 0.0  ;;  %v370_v17 = vadd.f32 %v1407_v12, %v1833_v38  ;;  %v361_v18 = vpop.f32.mrb[7].mxu1 }
 0x101   :  { %v298_v19 = vadd.f32 %v1833_v38, %v297_v15  ;;  %v425_v20 = vmax.f32 %v359_v11, 0.0  ;;  %v362_v21 = vadd.f32 %v1833_v38, %v361_v18  ;;  %v409_v24 = vmax.f32 %v295_v9, 0.0 }
 0x102   :  { %v412_v22 = vmax.f32 %v306_v14, 0.0  ;;  %v428_v23 = vmax.f32 %v370_v17, 0.0 }
 0x103   :  { %v410_v25 = vmax.f32 %v298_v19, 0.0  ;;  %v426_v26 = vmax.f32 %v362_v21, 0.0 }
 0x104   :  { %v440_v27 = vpack.c.bf16 %v412_v22, %v411_v13  ;;  %v1855_v28 = vpack.c.bf16 %v428_v23, %v427_v16 }
 0x105   :  { %v439_v29 = vpack.c.bf16 %v410_v25, %v409_v24  ;;  %v1394_v30 = vpop.f32.mrb[8].mxu0  ;;  %v1857_v31 = vpack.c.bf16 %v426_v26, %v425_v20  ;;  %v1410_v32 = vpop.f32.mrb[8].mxu1 }
 0x106   :  { %v319_v33 = vadd.f32 %v1394_v30, %v1833_v38  ;;  %v310_v34 = vpop.f32.mrb[9].mxu0  ;;  %v383_v35 = vadd.f32 %v1410_v32, %v1833_v38  ;;  %v374_v36 = vpop.f32.mrb[9].mxu1 }
 0x107   :  { %v311_v37 = vadd.f32 %v1833_v38, %v310_v34  ;;  %v1395_v39 = vpop.f32.mrb[10].mxu0  ;;  %1436 = vmatprep.mubr.bf16.mxu1 %v439_v29  ;;  %v375_v40 = vadd.f32 %v1833_v38, %v374_v36  ;;  %v1411_v41 = vpop.f32.mrb[10].mxu1 }
 0x108   :  { %v415_v42 = vmax.f32 %v319_v33, 0.0  ;;  %v322_v43 = vadd.f32 %v1395_v39, %v1833_v38  ;;  %v313_v44 = vpop.f32.mrb[11].mxu0  ;;  %1437 = vmatmul.mubr.bf16.gmra.mrb[20].mxu1 %v440_v27  ;;  %v431_v45 = vmax.f32 %v383_v35, 0.0  ;;  %v386_v46 = vadd.f32 %v1411_v41, %v1833_v38  ;;  %v377_v47 = vpop.f32.mrb[11].mxu1 }
 0x109   :  { %v314_v48 = vadd.f32 %v1833_v38, %v313_v44  ;;  %v429_v49 = vmax.f32 %v375_v40, 0.0  ;;  %v378_v50 = vadd.f32 %v1833_v38, %v377_v47  ;;  %v413_v53 = vmax.f32 %v311_v37, 0.0 }
 0x10a   :  { %v416_v51 = vmax.f32 %v322_v43, 0.0  ;;  %v432_v52 = vmax.f32 %v386_v46, 0.0 }
 0x10b   :  { %v414_v54 = vmax.f32 %v314_v48, 0.0  ;;  %v430_v55 = vmax.f32 %v378_v50, 0.0 }
 0x10c   :  { %v442_v56 = vpack.c.bf16 %v416_v51, %v415_v42  ;;  %v450_v57 = vpack.c.bf16 %v432_v52, %v431_v45 }
 0x10d   :  { %v441_v58 = vpack.c.bf16 %v414_v54, %v413_v53  ;;  %v1398_v59 = vpop.f32.mrb[12].mxu0  ;;  %v449_v60 = vpack.c.bf16 %v430_v55, %v429_v49  ;;  %v1414_v61 = vpop.f32.mrb[12].mxu1 }
 0x10e   :  { %v335_v62 = vadd.f32 %v1398_v59, %v1833_v38  ;;  %v326_v63 = vpop.f32.mrb[13].mxu0  ;;  %v399_v1 = vadd.f32 %v1414_v61, %v1833_v38  ;;  %v390_v2 = vpop.f32.mrb[13].mxu1 }
 0x10f   :  { %v327_v4 = vadd.f32 %v1833_v38, %v326_v63  ;;  %v1399_v5 = vpop.f32.mrb[14].mxu0  ;;  %1440 = vmatprep.mubr.bf16.mxu1 %v441_v58  ;;  %v391_v6 = vadd.f32 %v1833_v38, %v390_v2  ;;  %v1415_v7 = vpop.f32.mrb[14].mxu1 }
 0x110   :  { %v419_v8 = vmax.f32 %v335_v62, 0.0  ;;  %v338_v9 = vadd.f32 %v1399_v5, %v1833_v38  ;;  %v329_v10 = vpop.f32.mrb[15].mxu0  ;;  %1441 = vmatmul.mubr.bf16.gmra.mrb[24].mxu1 %v442_v56  ;;  %v435_v11 = vmax.f32 %v399_v1, 0.0  ;;  %v402_v12 = vadd.f32 %v1415_v7, %v1833_v38  ;;  %v393_v13 = vpop.f32.mrb[15].mxu1 }
 0x111   :  { %v330_v14 = vadd.f32 %v1833_v38, %v329_v10  ;;  %v433_v15 = vmax.f32 %v391_v6, 0.0  ;;  %v394_v16 = vadd.f32 %v1833_v38, %v393_v13  ;;  %v417_v19 = vmax.f32 %v327_v4, 0.0  ;;  %v1566_v38 = vld [vmem:[%s2311_s1 + $0xb0] sm:$0xff]  }
 0x112   :  { %v420_v17 = vmax.f32 %v338_v9, 0.0  ;;  %v436_v18 = vmax.f32 %v402_v12, 0.0  ;;  %1476 = vmatprep.subr.bf16.mxu0 %v1566_v38 }
 0x113   :  { %v418_v20 = vmax.f32 %v330_v14, 0.0  ;;  %v434_v21 = vmax.f32 %v394_v16, 0.0  ;;  %1477 = vmatpush3.bf16.msra.mxu0 %v1566_v38 }
 0x114   :  { %v444_v22 = vpack.c.bf16 %v420_v17, %v419_v8  ;;  %v452_v23 = vpack.c.bf16 %v436_v18, %v435_v11 }
 0x115   :  { %v443_v24 = vpack.c.bf16 %v418_v20, %v417_v19  ;;  %v451_v25 = vpack.c.bf16 %v434_v21, %v433_v15 }
 0x117   :  { %1444 = vmatprep.mubr.bf16.mxu1 %v443_v24 }
 0x118   :  { %1445 = vmatmul.mubr.bf16.gmra.mrb[28].mxu1 %v444_v22 }
 0x119   :  { %1448 = vmatprep.mubr.bf16.mxu1 %v1845_v3  ;;  %v1567_v3 = vld [vmem:[%s2311_s1 + $0xb8] sm:$0xff]  }
 0x11a   :  { %1478 = vmatprep.subr.bf16.mxu0 %v1567_v3 }
 0x11b   :  { %1479 = vmatpush3.bf16.msra.mxu0 %v1567_v3 }
 0x120   :  { %1449 = vmatmul.mubr.bf16.gmra.mrb[32].mxu1 %v1843_v0  ;;  %v1888_v0 = vld [vmem:[%s2313_s2 + $0x1] ss:$0 sm:$0xff] }
 0x121   :  { %1452 = vmatprep.mubr.bf16.mxu1 %v1857_v31 }
 0x128   :  { %1453 = vmatmul.mubr.bf16.gmra.mrb[36].mxu1 %v1855_v28 }
 0x129   :  { %1456 = vmatprep.mubr.bf16.mxu1 %v449_v60 }
 0x130   :  { %1457 = vmatmul.mubr.bf16.gmra.mrb[40].mxu1 %v450_v57 }
 0x131   :  { %1460 = vmatprep.mubr.bf16.mxu1 %v451_v25 }
 0x138   :  { %1461 = vmatmul.mubr.bf16.gmra.mrb[44].mxu1 %v452_v23 }
 0x1d3   :  { %v1434_v26 = vpop.f32.mrb[16].mxu1 }
 0x1d4   :  { %v549_v27 = vadd.f32 %v1434_v26, %v1888_v0  ;;  %v540_v28 = vpop.f32.mrb[17].mxu1 }
 0x1d5   :  { %v541_v29 = vadd.f32 %v1888_v0, %v540_v28  ;;  %v1435_v30 = vpop.f32.mrb[18].mxu1 }
 0x1d6   :  { %v552_v31 = vadd.f32 %v1435_v30, %v1888_v0  ;;  %v543_v32 = vpop.f32.mrb[19].mxu1  ;;  %v669_v34 = vmax.f32 %v549_v27, 0.0 }
 0x1d7   :  { %v544_v33 = vadd.f32 %v1888_v0, %v543_v32  ;;  %v667_v36 = vmax.f32 %v541_v29, 0.0 }
 0x1d8   :  { %v670_v35 = vmax.f32 %v552_v31, 0.0 }
 0x1d9   :  { %v668_v37 = vmax.f32 %v544_v33, 0.0 }
 0x1da   :  { %v700_v39 = vpack.c.bf16 %v670_v35, %v669_v34 }
 0x1db   :  { %v699_v40 = vpack.c.bf16 %v668_v37, %v667_v36  ;;  %v1438_v41 = vpop.f32.mrb[20].mxu1 }
 0x1dc   :  { %v565_v42 = vadd.f32 %v1438_v41, %v1888_v0  ;;  %v556_v43 = vpop.f32.mrb[21].mxu1 }
 0x1dd   :  { %v557_v44 = vadd.f32 %v1888_v0, %v556_v43  ;;  %v1439_v45 = vpop.f32.mrb[22].mxu1  ;;  %1480 = vmatprep.mubr.bf16.mxu0 %v699_v40 }
 0x1de   :  { %v568_v46 = vadd.f32 %v1439_v45, %v1888_v0  ;;  %v559_v47 = vpop.f32.mrb[23].mxu1  ;;  %1481 = vmatmul.mubr.bf16.vlgmr.msra.gmra.mrb[16].mxu0 %v700_v39  ;;  %v673_v49 = vmax.f32 %v565_v42, 0.0 }
 0x1df   :  { %v560_v48 = vadd.f32 %v1888_v0, %v559_v47  ;;  %v671_v51 = vmax.f32 %v557_v44, 0.0 }
 0x1e0   :  { %v674_v50 = vmax.f32 %v568_v46, 0.0 }
 0x1e1   :  { %v672_v52 = vmax.f32 %v560_v48, 0.0 }
 0x1e2   :  { %v702_v53 = vpack.c.bf16 %v674_v50, %v673_v49 }
 0x1e3   :  { %v701_v54 = vpack.c.bf16 %v672_v52, %v671_v51  ;;  %v1442_v55 = vpop.f32.mrb[24].mxu1 }
 0x1e4   :  { %v581_v56 = vadd.f32 %v1442_v55, %v1888_v0  ;;  %v572_v57 = vpop.f32.mrb[25].mxu1 }
 0x1e5   :  { %v573_v58 = vadd.f32 %v1888_v0, %v572_v57  ;;  %v1443_v59 = vpop.f32.mrb[26].mxu1  ;;  %1484 = vmatprep.mubr.bf16.mxu0 %v701_v54 }
 0x1e6   :  { %v584_v60 = vadd.f32 %v1443_v59, %v1888_v0  ;;  %v575_v61 = vpop.f32.mrb[27].mxu1  ;;  %1485 = vmatmul.mubr.bf16.gmra.mrb[20].mxu0 %v702_v53  ;;  %v677_v63 = vmax.f32 %v581_v56, 0.0 }
 0x1e7   :  { %v576_v62 = vadd.f32 %v1888_v0, %v575_v61  ;;  %v675_v2 = vmax.f32 %v573_v58, 0.0 }
 0x1e8   :  { %v678_v1 = vmax.f32 %v584_v60, 0.0 }
 0x1e9   :  { %v676_v4 = vmax.f32 %v576_v62, 0.0 }
 0x1ea   :  { %v704_v5 = vpack.c.bf16 %v678_v1, %v677_v63 }
 0x1eb   :  { %v703_v6 = vpack.c.bf16 %v676_v4, %v675_v2  ;;  %v1446_v7 = vpop.f32.mrb[28].mxu1 }
 0x1ec   :  { %v597_v8 = vadd.f32 %v1446_v7, %v1888_v0  ;;  %v588_v9 = vpop.f32.mrb[29].mxu1 }
 0x1ed   :  { %v589_v10 = vadd.f32 %v1888_v0, %v588_v9  ;;  %v1447_v11 = vpop.f32.mrb[30].mxu1  ;;  %1488 = vmatprep.mubr.bf16.mxu0 %v703_v6 }
 0x1ee   :  { %v600_v12 = vadd.f32 %v1447_v11, %v1888_v0  ;;  %v591_v13 = vpop.f32.mrb[31].mxu1  ;;  %1489 = vmatmul.mubr.bf16.gmra.mrb[24].mxu0 %v704_v5  ;;  %v681_v15 = vmax.f32 %v597_v8, 0.0 }
 0x1ef   :  { %v592_v14 = vadd.f32 %v1888_v0, %v591_v13  ;;  %v679_v17 = vmax.f32 %v589_v10, 0.0 }
 0x1f0   :  { %v682_v16 = vmax.f32 %v600_v12, 0.0 }
 0x1f1   :  { %v680_v18 = vmax.f32 %v592_v14, 0.0  ;;  %v1925_v14 = vld [vmem:[%s2313_s2 + $0x2] ss:$0 sm:$0xff] }
 0x1f2   :  { %v706_v19 = vpack.c.bf16 %v682_v16, %v681_v15 }
 0x1f3   :  { %v705_v20 = vpack.c.bf16 %v680_v18, %v679_v17  ;;  %v1450_v21 = vpop.f32.mrb[32].mxu1 }
 0x1f4   :  { %v613_v22 = vadd.f32 %v1450_v21, %v1888_v0  ;;  %v604_v23 = vpop.f32.mrb[33].mxu1 }
 0x1f5   :  { %v605_v24 = vadd.f32 %v1888_v0, %v604_v23  ;;  %v1451_v25 = vpop.f32.mrb[34].mxu1  ;;  %1492 = vmatprep.mubr.bf16.mxu0 %v705_v20 }
 0x1f6   :  { %v616_v38 = vadd.f32 %v1451_v25, %v1888_v0  ;;  %v607_v3 = vpop.f32.mrb[35].mxu1  ;;  %1493 = vmatmul.mubr.bf16.gmra.mrb[28].mxu0 %v706_v19  ;;  %v685_v27 = vmax.f32 %v613_v22, 0.0 }
 0x1f7   :  { %v608_v26 = vadd.f32 %v1888_v0, %v607_v3  ;;  %v683_v29 = vmax.f32 %v605_v24, 0.0 }
 0x1f8   :  { %v686_v28 = vmax.f32 %v616_v38, 0.0 }
 0x1f9   :  { %v684_v30 = vmax.f32 %v608_v26, 0.0 }
 0x1fa   :  { %v708_v31 = vpack.c.bf16 %v686_v28, %v685_v27 }
 0x1fb   :  { %v707_v32 = vpack.c.bf16 %v684_v30, %v683_v29  ;;  %v1454_v33 = vpop.f32.mrb[36].mxu1 }
 0x1fc   :  { %v629_v34 = vadd.f32 %v1454_v33, %v1888_v0  ;;  %v620_v35 = vpop.f32.mrb[37].mxu1 }
 0x1fd   :  { %v621_v36 = vadd.f32 %v1888_v0, %v620_v35  ;;  %v1455_v37 = vpop.f32.mrb[38].mxu1  ;;  %1496 = vmatprep.mubr.bf16.mxu0 %v707_v32 }
 0x1fe   :  { %v632_v39 = vadd.f32 %v1455_v37, %v1888_v0  ;;  %v623_v40 = vpop.f32.mrb[39].mxu1  ;;  %1497 = vmatmul.mubr.bf16.gmra.mrb[32].mxu0 %v708_v31  ;;  %v689_v42 = vmax.f32 %v629_v34, 0.0 }
 0x1ff   :  { %v624_v41 = vadd.f32 %v1888_v0, %v623_v40  ;;  %v687_v44 = vmax.f32 %v621_v36, 0.0 }
 0x200   :  { %v690_v43 = vmax.f32 %v632_v39, 0.0 }
 0x201   :  { %v688_v45 = vmax.f32 %v624_v41, 0.0 }
 0x202   :  { %v710_v46 = vpack.c.bf16 %v690_v43, %v689_v42 }
 0x203   :  { %v709_v47 = vpack.c.bf16 %v688_v45, %v687_v44  ;;  %v1458_v48 = vpop.f32.mrb[40].mxu1 }
 0x204   :  { %v645_v49 = vadd.f32 %v1458_v48, %v1888_v0  ;;  %v636_v50 = vpop.f32.mrb[41].mxu1 }
 0x205   :  { %v637_v51 = vadd.f32 %v1888_v0, %v636_v50  ;;  %v1459_v52 = vpop.f32.mrb[42].mxu1  ;;  %1500 = vmatprep.mubr.bf16.mxu0 %v709_v47 }
 0x206   :  { %v648_v53 = vadd.f32 %v1459_v52, %v1888_v0  ;;  %v639_v54 = vpop.f32.mrb[43].mxu1  ;;  %1501 = vmatmul.mubr.bf16.gmra.mrb[36].mxu0 %v710_v46  ;;  %v693_v56 = vmax.f32 %v645_v49, 0.0 }
 0x207   :  { %v640_v55 = vadd.f32 %v1888_v0, %v639_v54  ;;  %v691_v58 = vmax.f32 %v637_v51, 0.0 }
 0x208   :  { %v694_v57 = vmax.f32 %v648_v53, 0.0 }
 0x209   :  { %v692_v59 = vmax.f32 %v640_v55, 0.0 }
 0x20a   :  { %v712_v60 = vpack.c.bf16 %v694_v57, %v693_v56 }
 0x20b   :  { %v711_v61 = vpack.c.bf16 %v692_v59, %v691_v58  ;;  %v1462_v62 = vpop.f32.mrb[44].mxu1 }
 0x20c   :  { %v661_v63 = vadd.f32 %v1462_v62, %v1888_v0  ;;  %v652_v1 = vpop.f32.mrb[45].mxu1 }
 0x20d   :  { %v653_v2 = vadd.f32 %v1888_v0, %v652_v1  ;;  %v1463_v4 = vpop.f32.mrb[46].mxu1  ;;  %1504 = vmatprep.mubr.bf16.mxu0 %v711_v61 }
 0x20e   :  { %v664_v5 = vadd.f32 %v1463_v4, %v1888_v0  ;;  %v655_v6 = vpop.f32.mrb[47].mxu1  ;;  %1505 = vmatmul.mubr.bf16.gmra.mrb[40].mxu0 %v712_v60  ;;  %v697_v8 = vmax.f32 %v661_v63, 0.0 }
 0x20f   :  { %v656_v7 = vadd.f32 %v1888_v0, %v655_v6  ;;  %v695_v10 = vmax.f32 %v653_v2, 0.0 }
 0x210   :  { %v698_v9 = vmax.f32 %v664_v5, 0.0 }
 0x211   :  { %v696_v11 = vmax.f32 %v656_v7, 0.0 }
 0x212   :  { %v714_v12 = vpack.c.bf16 %v698_v9, %v697_v8 }
 0x213   :  { %v713_v13 = vpack.c.bf16 %v696_v11, %v695_v10 }
 0x215   :  { %1508 = vmatprep.mubr.bf16.mxu0 %v713_v13 }
 0x216   :  { %1509 = vmatmul.mubr.bf16.gmra.mrb[44].mxu0 %v714_v12 }
 0x2b1   :  { %v1482_v15 = vpop.f32.mrb[16].mxu0 }
 0x2b2   :  { %v1928_v16 = vadd.f32 %v1482_v15, %v1925_v14  ;;  %v802_v17 = vpop.f32.mrb[17].mxu0 }
 0x2b3   :  { %v1931_v0 = vadd.f32 %v1925_v14, %v802_v17  ;;  %v1483_v18 = vpop.f32.mrb[18].mxu0 }
 0x2b4   :  { %933 = vmax.xlane.f32.xlu1 %v1928_v16  ;;  %v805_v19 = vpop.f32.mrb[19].mxu0  ;;  %v1936_v20 = vadd.f32 %v1483_v18, %v1925_v14 }
 0x2b5   :  { %929 = vmax.xlane.f32.xlu0 %v1931_v0  ;;  %v1939_v21 = vadd.f32 %v1925_v14, %v805_v19 }
 0x2b8   :  { %935 = vmax.xlane.f32.xlu1 %v1936_v20 }
 0x2b9   :  { %v1486_v22 = vpop.f32.mrb[20].mxu0  ;;  %931 = vmax.xlane.f32.xlu0 %v1939_v21 }
 0x2ba   :  { %v1944_v23 = vadd.f32 %v1486_v22, %v1925_v14  ;;  %v818_v24 = vpop.f32.mrb[21].mxu0 }
 0x2bb   :  { %v1487_v25 = vpop.f32.mrb[22].mxu0  ;;  %v1952_v26 = vadd.f32 %v1925_v14, %v818_v24 }
 0x2bc   :  { %v1947_v38 = vadd.f32 %v1487_v25, %v1925_v14  ;;  %v821_v3 = vpop.f32.mrb[23].mxu0 }
 0x2bd   :  { %941 = vmax.xlane.f32.xlu0 %v1944_v23  ;;  %v1955_v27 = vadd.f32 %v1925_v14, %v821_v3 }
 0x2be   :  { %943 = vmax.xlane.f32.xlu1 %v1947_v38 }
 0x2c1   :  { %v1490_v28 = vpop.f32.mrb[24].mxu0  ;;  %937 = vmax.xlane.f32.xlu0 %v1952_v26 }
 0x2c2   :  { %v1959_v29 = vadd.f32 %v1490_v28, %v1925_v14  ;;  %v834_v30 = vpop.f32.mrb[25].mxu0  ;;  %939 = vmax.xlane.f32.xlu1 %v1955_v27 }
 0x2c3   :  { %v1491_v31 = vpop.f32.mrb[26].mxu0  ;;  %v1968_v34 = vadd.f32 %v1925_v14, %v834_v30 }
 0x2c4   :  { %v1963_v32 = vadd.f32 %v1491_v31, %v1925_v14  ;;  %v837_v33 = vpop.f32.mrb[27].mxu0 }
 0x2c5   :  { %949 = vmax.xlane.f32.xlu0 %v1959_v29  ;;  %v1971_v35 = vadd.f32 %v1925_v14, %v837_v33 }
 0x2c6   :  { %951 = vmax.xlane.f32.xlu1 %v1963_v32 }
 0x2c9   :  { %v1494_v36 = vpop.f32.mrb[28].mxu0  ;;  %945 = vmax.xlane.f32.xlu0 %v1968_v34 }
 0x2ca   :  { %v1975_v37 = vadd.f32 %v1494_v36, %v1925_v14  ;;  %v850_v39 = vpop.f32.mrb[29].mxu0  ;;  %947 = vmax.xlane.f32.xlu1 %v1971_v35 }
 0x2cb   :  { %v1495_v40 = vpop.f32.mrb[30].mxu0  ;;  %v1984_v43 = vadd.f32 %v1925_v14, %v850_v39 }
 0x2cc   :  { %v1979_v41 = vadd.f32 %v1495_v40, %v1925_v14  ;;  %v853_v42 = vpop.f32.mrb[31].mxu0 }
 0x2cd   :  { %957 = vmax.xlane.f32.xlu0 %v1975_v37  ;;  %v1987_v44 = vadd.f32 %v1925_v14, %v853_v42 }
 0x2ce   :  { %959 = vmax.xlane.f32.xlu1 %v1979_v41 }
 0x2d1   :  { %v1498_v45 = vpop.f32.mrb[32].mxu0  ;;  %953 = vmax.xlane.f32.xlu0 %v1984_v43 }
 0x2d2   :  { %v1991_v46 = vadd.f32 %v1498_v45, %v1925_v14  ;;  %v866_v47 = vpop.f32.mrb[33].mxu0  ;;  %955 = vmax.xlane.f32.xlu1 %v1987_v44 }
 0x2d3   :  { %v1499_v48 = vpop.f32.mrb[34].mxu0  ;;  %v2000_v51 = vadd.f32 %v1925_v14, %v866_v47 }
 0x2d4   :  { %v1995_v49 = vadd.f32 %v1499_v48, %v1925_v14  ;;  %v869_v50 = vpop.f32.mrb[35].mxu0 }
 0x2d5   :  { %965 = vmax.xlane.f32.xlu0 %v1991_v46  ;;  %v2003_v52 = vadd.f32 %v1925_v14, %v869_v50 }
 0x2d6   :  { %967 = vmax.xlane.f32.xlu1 %v1995_v49 }
 0x2d9   :  { %v1502_v53 = vpop.f32.mrb[36].mxu0  ;;  %961 = vmax.xlane.f32.xlu0 %v2000_v51 }
 0x2da   :  { %v2007_v54 = vadd.f32 %v1502_v53, %v1925_v14  ;;  %v882_v55 = vpop.f32.mrb[37].mxu0  ;;  %963 = vmax.xlane.f32.xlu1 %v2003_v52 }
 0x2db   :  { %v1503_v56 = vpop.f32.mrb[38].mxu0  ;;  %v2016_v59 = vadd.f32 %v1925_v14, %v882_v55 }
 0x2dc   :  { %v2011_v57 = vadd.f32 %v1503_v56, %v1925_v14  ;;  %v885_v58 = vpop.f32.mrb[39].mxu0 }
 0x2dd   :  { %973 = vmax.xlane.f32.xlu0 %v2007_v54  ;;  %v2019_v60 = vadd.f32 %v1925_v14, %v885_v58 }
 0x2de   :  { %975 = vmax.xlane.f32.xlu1 %v2011_v57 }
 0x2e1   :  { %v1506_v61 = vpop.f32.mrb[40].mxu0  ;;  %969 = vmax.xlane.f32.xlu0 %v2016_v59 }
 0x2e2   :  { %v2023_v62 = vadd.f32 %v1506_v61, %v1925_v14  ;;  %v898_v63 = vpop.f32.mrb[41].mxu0  ;;  %971 = vmax.xlane.f32.xlu1 %v2019_v60 }
 0x2e3   :  { %v1507_v1 = vpop.f32.mrb[42].mxu0  ;;  %v2032_v5 = vadd.f32 %v1925_v14, %v898_v63 }
 0x2e4   :  { %v2027_v2 = vadd.f32 %v1507_v1, %v1925_v14  ;;  %v901_v4 = vpop.f32.mrb[43].mxu0 }
 0x2e5   :  { %981 = vmax.xlane.f32.xlu0 %v2023_v62  ;;  %v2035_v6 = vadd.f32 %v1925_v14, %v901_v4 }
 0x2e6   :  { %983 = vmax.xlane.f32.xlu1 %v2027_v2 }
 0x2e9   :  { %v1510_v7 = vpop.f32.mrb[44].mxu0  ;;  %977 = vmax.xlane.f32.xlu0 %v2032_v5 }
 0x2ea   :  { %v914_v8 = vpop.f32.mrb[45].mxu0  ;;  %979 = vmax.xlane.f32.xlu1 %v2035_v6  ;;  %v2047_v13 = vadd.f32 %v1510_v7, %v1925_v14 }
 0x2eb   :  { %v2040_v9 = vadd.f32 %v1925_v14, %v914_v8  ;;  %v1511_v10 = vpop.f32.mrb[46].mxu0 }
 0x2ec   :  { %v917_v11 = vpop.f32.mrb[47].mxu0  ;;  %v2051_v15 = vadd.f32 %v1511_v10, %v1925_v14 }
 0x2ed   :  { %v2043_v12 = vadd.f32 %v1925_v14, %v917_v11  ;;  %985 = vmax.xlane.f32.xlu0 %v2040_v9 }
 0x2ef   :  { %987 = vmax.xlane.f32.xlu1 %v2043_v12 }
 0x2f1   :  { %989 = vmax.xlane.f32.xlu0 %v2047_v13 }
 0x2f3   :  { %991 = vmax.xlane.f32.xlu1 %v2051_v15 }
 0x341   :  { %v934_v17 = vpop.xlane.xlu1 %933 }
 0x342   :  { %v995_v18 = vsub.f32 %v1928_v16, %v934_v17  ;;  %v930_v19 = vpop.xlane.xlu0 %929 }
 0x343   :  { %v993_v22 = vsub.f32 %v1931_v0, %v930_v19 }
 0x344   :  { %v1029_v24 = vmul.f32 1.442695, %v995_v18 }
 0x345   :  { %v1025_v25 = vmul.f32 1.442695, %v993_v22  ;;  %v936_v3 = vpop.xlane.xlu1 %935 }
 0x346   :  { %1568 = vpow2.f32 %v1029_v24  ;;  %v996_v28 = vsub.f32 %v1936_v20, %v936_v3  ;;  %v932_v30 = vpop.xlane.xlu0 %931 }
 0x347   :  { %v994_v14 = vsub.f32 %v1939_v21, %v932_v30  ;;  %1570 = vpow2.f32 %v1025_v25 }
 0x348   :  { %v1031_v31 = vmul.f32 1.442695, %v996_v28 }
 0x349   :  { %v1027_v33 = vmul.f32 1.442695, %v994_v14 }
 0x34a   :  { %1572 = vpow2.f32 %v1031_v31  ;;  %v942_v36 = vpop.xlane.xlu0 %941 }
 0x34b   :  { %v999_v39 = vsub.f32 %v1944_v23, %v942_v36  ;;  %v944_v16 = vpop.xlane.xlu1 %943  ;;  %1574 = vpow2.f32 %v1027_v33 }
 0x34c   :  { %v1000_v40 = vsub.f32 %v1947_v38, %v944_v16 }
 0x34d   :  { %v1037_v0 = vmul.f32 1.442695, %v999_v39 }
 0x34e   :  { %v1039_v42 = vmul.f32 1.442695, %v1000_v40  ;;  %v938_v45 = vpop.xlane.xlu0 %937 }
 0x34f   :  { %1576 = vpow2.f32 %v1037_v0  ;;  %v997_v20 = vsub.f32 %v1952_v26, %v938_v45  ;;  %v940_v47 = vpop.xlane.xlu1 %939 }
 0x350   :  { %v2062_v48 = vpop.eup %1568  ;;  %v998_v21 = vsub.f32 %v1955_v27, %v940_v47  ;;  %1578 = vpow2.f32 %v1039_v42 }
 0x351   :  { %v1033_v50 = vmul.f32 1.442695, %v997_v20  ;;  %1093 = vadd.xlane.f32.xlu0 %v2062_v48  ;;  %v2066_v55 = vpop.eup %1570 }
 0x352   :  { %v1035_v23 = vmul.f32 1.442695, %v998_v21  ;;  %v950_v53 = vpop.xlane.xlu0 %949 }
 0x353   :  { %1580 = vpow2.f32 %v1033_v50  ;;  %v1003_v38 = vsub.f32 %v1959_v29, %v950_v53  ;;  %v952_v56 = vpop.xlane.xlu1 %951 }
 0x354   :  { %v2069_v58 = vpop.eup %1572  ;;  %v1004_v26 = vsub.f32 %v1963_v32, %v952_v56  ;;  %1582 = vpow2.f32 %v1035_v23 }
 0x355   :  { %v1045_v61 = vmul.f32 1.442695, %v1003_v38  ;;  %1095 = vadd.xlane.f32.xlu1 %v2069_v58  ;;  %1089 = vadd.xlane.f32.xlu0 %v2066_v55  ;;  %v2075_v7 = vpop.eup %1574 }
 0x356   :  { %v1047_v27 = vmul.f32 1.442695, %v1004_v26  ;;  %v946_v63 = vpop.xlane.xlu0 %945 }
 0x357   :  { %1584 = vpow2.f32 %v1045_v61  ;;  %v1001_v1 = vsub.f32 %v1968_v34, %v946_v63  ;;  %v948_v4 = vpop.xlane.xlu1 %947 }
 0x358   :  { %v1002_v29 = vsub.f32 %v1971_v35, %v948_v4  ;;  %1586 = vpow2.f32 %v1047_v27 }
 0x359   :  { %v2078_v8 = vpop.eup %1576  ;;  %v1041_v10 = vmul.f32 1.442695, %v1001_v1  ;;  %1091 = vadd.xlane.f32.xlu1 %v2075_v7 }
 0x35a   :  { %v1043_v32 = vmul.f32 1.442695, %v1002_v29  ;;  %1101 = vadd.xlane.f32.xlu0 %v2078_v8  ;;  %v958_v11 = vpop.xlane.xlu0 %957  ;;  %v2083_v34 = vpop.eup %1578 }
 0x35b   :  { %1588 = vpow2.f32 %v1041_v10  ;;  %v1007_v17 = vsub.f32 %v1975_v37, %v958_v11  ;;  %v960_v18 = vpop.xlane.xlu1 %959 }
 0x35c   :  { %v1008_v19 = vsub.f32 %v1979_v41, %v960_v18  ;;  %1590 = vpow2.f32 %v1043_v32 }
 0x35d   :  { %v2086_v22 = vpop.eup %1580  ;;  %v1053_v35 = vmul.f32 1.442695, %v1007_v17  ;;  %1103 = vadd.xlane.f32.xlu1 %v2083_v34 }
 0x35e   :  { %v1055_v24 = vmul.f32 1.442695, %v1008_v19  ;;  %1097 = vadd.xlane.f32.xlu0 %v2086_v22  ;;  %v954_v25 = vpop.xlane.xlu0 %953  ;;  %v2091_v37 = vpop.eup %1582 }
 0x35f   :  { %1592 = vpow2.f32 %v1053_v35  ;;  %v1005_v3 = vsub.f32 %v1984_v43, %v954_v25  ;;  %v956_v28 = vpop.xlane.xlu1 %955 }
 0x360   :  { %v1006_v30 = vsub.f32 %v1987_v44, %v956_v28  ;;  %1594 = vpow2.f32 %v1055_v24 }
 0x361   :  { %v2094_v14 = vpop.eup %1584  ;;  %v1049_v41 = vmul.f32 1.442695, %v1005_v3  ;;  %1099 = vadd.xlane.f32.xlu1 %v2091_v37 }
 0x362   :  { %v1051_v31 = vmul.f32 1.442695, %v1006_v30  ;;  %1109 = vadd.xlane.f32.xlu0 %v2094_v14  ;;  %v966_v33 = vpop.xlane.xlu0 %965  ;;  %v2099_v43 = vpop.eup %1586 }
 0x363   :  { %1596 = vpow2.f32 %v1049_v41  ;;  %v1011_v36 = vsub.f32 %v1991_v46, %v966_v33  ;;  %v968_v39 = vpop.xlane.xlu1 %967 }
 0x364   :  { %v1012_v16 = vsub.f32 %v1995_v49, %v968_v39  ;;  %1598 = vpow2.f32 %v1051_v31 }
 0x365   :  { %v2102_v40 = vpop.eup %1588  ;;  %v1061_v44 = vmul.f32 1.442695, %v1011_v36  ;;  %1111 = vadd.xlane.f32.xlu1 %v2099_v43 }
 0x366   :  { %v1063_v0 = vmul.f32 1.442695, %v1012_v16  ;;  %1105 = vadd.xlane.f32.xlu0 %v2102_v40  ;;  %v962_v42 = vpop.xlane.xlu0 %961  ;;  %v2107_v46 = vpop.eup %1590 }
 0x367   :  { %1600 = vpow2.f32 %v1061_v44  ;;  %v1009_v45 = vsub.f32 %v2000_v51, %v962_v42  ;;  %v964_v20 = vpop.xlane.xlu1 %963 }
 0x368   :  { %v1010_v47 = vsub.f32 %v2003_v52, %v964_v20  ;;  %1602 = vpow2.f32 %v1063_v0 }
 0x369   :  { %v2110_v21 = vpop.eup %1592  ;;  %v1057_v49 = vmul.f32 1.442695, %v1009_v45  ;;  %1107 = vadd.xlane.f32.xlu1 %v2107_v46 }
 0x36a   :  { %v1059_v50 = vmul.f32 1.442695, %v1010_v47  ;;  %1117 = vadd.xlane.f32.xlu0 %v2110_v21  ;;  %v974_v23 = vpop.xlane.xlu0 %973  ;;  %v2115_v51 = vpop.eup %1594 }
 0x36b   :  { %1604 = vpow2.f32 %v1057_v49  ;;  %v1015_v53 = vsub.f32 %v2007_v54, %v974_v23  ;;  %v976_v38 = vpop.xlane.xlu1 %975 }
 0x36c   :  { %v1016_v56 = vsub.f32 %v2011_v57, %v976_v38  ;;  %1606 = vpow2.f32 %v1059_v50 }
 0x36d   :  { %v2118_v26 = vpop.eup %1596  ;;  %v1069_v52 = vmul.f32 1.442695, %v1015_v53  ;;  %1119 = vadd.xlane.f32.xlu1 %v2115_v51 }
 0x36e   :  { %v1071_v61 = vmul.f32 1.442695, %v1016_v56  ;;  %1113 = vadd.xlane.f32.xlu0 %v2118_v26  ;;  %v970_v27 = vpop.xlane.xlu0 %969  ;;  %v2123_v54 = vpop.eup %1598 }
 0x36f   :  { %1608 = vpow2.f32 %v1069_v52  ;;  %v1013_v63 = vsub.f32 %v2016_v59, %v970_v27  ;;  %v972_v1 = vpop.xlane.xlu1 %971 }
 0x370   :  { %v1014_v4 = vsub.f32 %v2019_v60, %v972_v1  ;;  %1610 = vpow2.f32 %v1071_v61 }
 0x371   :  { %v2126_v29 = vpop.eup %1600  ;;  %v1065_v57 = vmul.f32 1.442695, %v1013_v63  ;;  %1115 = vadd.xlane.f32.xlu1 %v2123_v54 }
 0x372   :  { %v1067_v10 = vmul.f32 1.442695, %v1014_v4  ;;  %1125 = vadd.xlane.f32.xlu0 %v2126_v29  ;;  %v982_v32 = vpop.xlane.xlu0 %981  ;;  %v2131_v59 = vpop.eup %1602 }
 0x373   :  { %1612 = vpow2.f32 %v1065_v57  ;;  %v1019_v11 = vsub.f32 %v2023_v62, %v982_v32  ;;  %v984_v17 = vpop.xlane.xlu1 %983 }
 0x374   :  { %v1020_v18 = vsub.f32 %v2027_v2, %v984_v17  ;;  %1614 = vpow2.f32 %v1067_v10 }
 0x375   :  { %v2134_v19 = vpop.eup %1604  ;;  %v1077_v60 = vmul.f32 1.442695, %v1019_v11  ;;  %1127 = vadd.xlane.f32.xlu1 %v2131_v59 }
 0x376   :  { %v1079_v35 = vmul.f32 1.442695, %v1020_v18  ;;  %1121 = vadd.xlane.f32.xlu0 %v2134_v19  ;;  %v978_v24 = vpop.xlane.xlu0 %977  ;;  %v2139_v62 = vpop.eup %1606 }
 0x377   :  { %1616 = vpow2.f32 %v1077_v60  ;;  %v1017_v25 = vsub.f32 %v2032_v5, %v978_v24  ;;  %v980_v3 = vpop.xlane.xlu1 %979 }
 0x378   :  { %v1018_v28 = vsub.f32 %v2035_v6, %v980_v3  ;;  %1618 = vpow2.f32 %v1079_v35 }
 0x379   :  { %v2142_v30 = vpop.eup %1608  ;;  %v1073_v2 = vmul.f32 1.442695, %v1017_v25  ;;  %1123 = vadd.xlane.f32.xlu1 %v2139_v62 }
 0x37a   :  { %v1075_v41 = vmul.f32 1.442695, %v1018_v28  ;;  %1133 = vadd.xlane.f32.xlu0 %v2142_v30  ;;  %v986_v31 = vpop.xlane.xlu0 %985  ;;  %v2147_v36 = vpop.eup %1610 }
 0x37b   :  { %1620 = vpow2.f32 %v1073_v2  ;;  %v1021_v33 = vsub.f32 %v2040_v9, %v986_v31 }
 0x37c   :  { %v988_v5 = vpop.xlane.xlu1 %987  ;;  %1622 = vpow2.f32 %v1075_v41 }
 0x37d   :  { %v2149_v39 = vpop.eup %1612  ;;  %v1081_v16 = vmul.f32 1.442695, %v1021_v33  ;;  %v1022_v6 = vsub.f32 %v2043_v12, %v988_v5  ;;  %1135 = vadd.xlane.f32.xlu1 %v2147_v36 }
 0x37e   :  { %1129 = vadd.xlane.f32.xlu0 %v2149_v39  ;;  %v990_v44 = vpop.xlane.xlu0 %989  ;;  %v2155_v45 = vpop.eup %1614 }
 0x37f   :  { %1624 = vpow2.f32 %v1081_v16  ;;  %v1083_v0 = vmul.f32 1.442695, %v1022_v6  ;;  %v1023_v42 = vsub.f32 %v2047_v13, %v990_v44 }
 0x380   :  { %v992_v9 = vpop.xlane.xlu1 %991 }
 0x381   :  { %v2157_v20 = vpop.eup %1616  ;;  %1626 = vpow2.f32 %v1083_v0  ;;  %v1085_v47 = vmul.f32 1.442695, %v1023_v42  ;;  %v1024_v49 = vsub.f32 %v2051_v15, %v992_v9  ;;  %1131 = vadd.xlane.f32.xlu1 %v2155_v45 }
 0x382   :  { %1141 = vadd.xlane.f32.xlu0 %v2157_v20  ;;  %v2162_v50 = vpop.eup %1618 }
 0x383   :  { %1628 = vpow2.f32 %v1085_v47  ;;  %v1087_v12 = vmul.f32 1.442695, %v1024_v49 }
 0x385   :  { %v2164_v23 = vpop.eup %1620  ;;  %1630 = vpow2.f32 %v1087_v12  ;;  %1143 = vadd.xlane.f32.xlu1 %v2162_v50 }
 0x386   :  { %1137 = vadd.xlane.f32.xlu0 %v2164_v23  ;;  %v2168_v13 = vpop.eup %1622 }
 0x389   :  { %v2170_v53 = vpop.eup %1624  ;;  %1139 = vadd.xlane.f32.xlu1 %v2168_v13 }
 0x38a   :  { %1145 = vadd.xlane.f32.xlu0 %v2170_v53 }
 0x38b   :  { %v2174_v15 = vpop.eup %1626 }
 0x38d   :  { %v2176_v38 = vpop.eup %1628  ;;  %1147 = vadd.xlane.f32.xlu1 %v2174_v15 }
 0x38e   :  { %1149 = vadd.xlane.f32.xlu0 %v2176_v38 }
 0x38f   :  { %v2180_v56 = vpop.eup %1630 }
 0x391   :  { %1151 = vadd.xlane.f32.xlu1 %v2180_v56 }
 0x3de   :  { %v1094_v52 = vpop.xlane.xlu0 %1093 }
 0x3df   :  { %1632 = vrcp.f32 %v1094_v52 }
 0x3e2   :  { %v1096_v61 = vpop.xlane.xlu1 %1095  ;;  %v1090_v27 = vpop.xlane.xlu0 %1089 }
 0x3e3   :  { %1634 = vrcp.f32 %v1096_v61 }
 0x3e4   :  { %1636 = vrcp.f32 %v1090_v27 }
 0x3e6   :  { %v1092_v63 = vpop.xlane.xlu1 %1091 }
 0x3e7   :  { %1638 = vrcp.f32 %v1092_v63  ;;  %v1102_v1 = vpop.xlane.xlu0 %1101 }
 0x3e8   :  { %1640 = vrcp.f32 %v1102_v1 }
 0x3e9   :  { %v1633_v4 = vpop.eup %1632 }
 0x3ea   :  { %v1158_v57 = vmul.f32 %v1633_v4, %v2062_v48  ;;  %v1104_v10 = vpop.xlane.xlu1 %1103 }
 0x3eb   :  { %1642 = vrcp.f32 %v1104_v10  ;;  %v1098_v32 = vpop.xlane.xlu0 %1097 }
 0x3ec   :  { %1219 = vst [vmem:[%s2314_s3 + $0x10] sm:$0xff] %v1158_v57  ;;  %1644 = vrcp.f32 %v1098_v32 }
 0x3ed   :  { %v1635_v11 = vpop.eup %1634 }
 0x3ee   :  { %v1637_v17 = vpop.eup %1636  ;;  %v1160_v18 = vmul.f32 %v1635_v11, %v2069_v58  ;;  %v1100_v60 = vpop.xlane.xlu1 %1099 }
 0x3ef   :  { %v1154_v35 = vmul.f32 %v1637_v17, %v2066_v55  ;;  %1646 = vrcp.f32 %v1100_v60  ;;  %v1110_v24 = vpop.xlane.xlu0 %1109 }
 0x3f0   :  { %1220 = vst [vmem:[%s2314_s3 + $0x18] sm:$0xff] %v1160_v18  ;;  %1648 = vrcp.f32 %v1110_v24 }
 0x3f1   :  { %v1639_v48 = vpop.eup %1638  ;;  %1217 = vst [vmem:[%s2314_s3] sm:$0xff] %v1154_v35 }
 0x3f2   :  { %v1641_v25 = vpop.eup %1640  ;;  %v1156_v3 = vmul.f32 %v1639_v48, %v2075_v7  ;;  %v1112_v28 = vpop.xlane.xlu1 %1111 }
 0x3f3   :  { %v1166_v58 = vmul.f32 %v1641_v25, %v2078_v8  ;;  %1650 = vrcp.f32 %v1112_v28  ;;  %v1106_v55 = vpop.xlane.xlu0 %1105 }
 0x3f4   :  { %1218 = vst [vmem:[%s2314_s3 + $0x8] sm:$0xff] %v1156_v3  ;;  %1652 = vrcp.f32 %v1106_v55 }
 0x3f5   :  { %v1643_v2 = vpop.eup %1642  ;;  %1223 = vst [vmem:[%s2314_s3 + $0x30] sm:$0xff] %v1166_v58 }
 0x3f6   :  { %v1645_v41 = vpop.eup %1644  ;;  %v1168_v31 = vmul.f32 %v1643_v2, %v2083_v34  ;;  %v1108_v33 = vpop.xlane.xlu1 %1107 }
 0x3f7   :  { %v1162_v7 = vmul.f32 %v1645_v41, %v2086_v22  ;;  %1654 = vrcp.f32 %v1108_v33  ;;  %v1118_v8 = vpop.xlane.xlu0 %1117 }
 0x3f8   :  { %1224 = vst [vmem:[%s2314_s3 + $0x38] sm:$0xff] %v1168_v31  ;;  %1656 = vrcp.f32 %v1118_v8 }
 0x3f9   :  { %v1647_v5 = vpop.eup %1646  ;;  %1221 = vst [vmem:[%s2314_s3 + $0x20] sm:$0xff] %v1162_v7 }
 0x3fa   :  { %v1649_v16 = vpop.eup %1648  ;;  %v1164_v6 = vmul.f32 %v1647_v5, %v2091_v37  ;;  %v1120_v44 = vpop.xlane.xlu1 %1119 }
 0x3fb   :  { %v1174_v34 = vmul.f32 %v1649_v16, %v2094_v14  ;;  %1658 = vrcp.f32 %v1120_v44  ;;  %v1114_v22 = vpop.xlane.xlu0 %1113 }
 0x3fc   :  { %1222 = vst [vmem:[%s2314_s3 + $0x28] sm:$0xff] %v1164_v6  ;;  %1660 = vrcp.f32 %v1114_v22 }
 0x3fd   :  { %v1651_v0 = vpop.eup %1650  ;;  %1227 = vst [vmem:[%s2314_s3 + $0x50] sm:$0xff] %v1174_v34 }
 0x3fe   :  { %v1653_v42 = vpop.eup %1652  ;;  %v1176_v9 = vmul.f32 %v1651_v0, %v2099_v43  ;;  %v1116_v47 = vpop.xlane.xlu1 %1115 }
 0x3ff   :  { %v1170_v37 = vmul.f32 %v1653_v42, %v2102_v40  ;;  %1662 = vrcp.f32 %v1116_v47  ;;  %v1126_v14 = vpop.xlane.xlu0 %1125 }
 0x400   :  { %1228 = vst [vmem:[%s2314_s3 + $0x58] sm:$0xff] %v1176_v9  ;;  %1664 = vrcp.f32 %v1126_v14 }
 0x401   :  { %v1655_v49 = vpop.eup %1654  ;;  %1225 = vst [vmem:[%s2314_s3 + $0x40] sm:$0xff] %v1170_v37 }
 0x402   :  { %v1657_v12 = vpop.eup %1656  ;;  %v1172_v52 = vmul.f32 %v1655_v49, %v2107_v46  ;;  %v1128_v61 = vpop.xlane.xlu1 %1127 }
 0x403   :  { %v1182_v43 = vmul.f32 %v1657_v12, %v2110_v21  ;;  %1666 = vrcp.f32 %v1128_v61  ;;  %v1122_v40 = vpop.xlane.xlu0 %1121 }
 0x404   :  { %1226 = vst [vmem:[%s2314_s3 + $0x48] sm:$0xff] %v1172_v52  ;;  %1668 = vrcp.f32 %v1122_v40 }
 0x405   :  { %v1659_v27 = vpop.eup %1658  ;;  %1231 = vst [vmem:[%s2314_s3 + $0x70] sm:$0xff] %v1182_v43 }
 0x406   :  { %v1661_v63 = vpop.eup %1660  ;;  %v1184_v1 = vmul.f32 %v1659_v27, %v2115_v51  ;;  %v1124_v4 = vpop.xlane.xlu1 %1123 }
 0x407   :  { %v1178_v46 = vmul.f32 %v1661_v63, %v2118_v26  ;;  %1670 = vrcp.f32 %v1124_v4  ;;  %v1134_v21 = vpop.xlane.xlu0 %1133 }
 0x408   :  { %1232 = vst [vmem:[%s2314_s3 + $0x78] sm:$0xff] %v1184_v1  ;;  %1672 = vrcp.f32 %v1134_v21 }
 0x409   :  { %v1663_v57 = vpop.eup %1662  ;;  %1229 = vst [vmem:[%s2314_s3 + $0x60] sm:$0xff] %v1178_v46 }
 0x40a   :  { %v1665_v10 = vpop.eup %1664  ;;  %v1180_v32 = vmul.f32 %v1663_v57, %v2123_v54  ;;  %v1136_v11 = vpop.xlane.xlu1 %1135 }
 0x40b   :  { %v1190_v51 = vmul.f32 %v1665_v10, %v2126_v29  ;;  %1674 = vrcp.f32 %v1136_v11  ;;  %v1130_v26 = vpop.xlane.xlu0 %1129 }
 0x40c   :  { %1230 = vst [vmem:[%s2314_s3 + $0x68] sm:$0xff] %v1180_v32  ;;  %1676 = vrcp.f32 %v1130_v26 }
 0x40d   :  { %v1667_v17 = vpop.eup %1666  ;;  %1235 = vst [vmem:[%s2314_s3 + $0x90] sm:$0xff] %v1190_v51 }
 0x40e   :  { %v1669_v18 = vpop.eup %1668  ;;  %v1192_v60 = vmul.f32 %v1667_v17, %v2131_v59  ;;  %v1132_v35 = vpop.xlane.xlu1 %1131 }
 0x40f   :  { %v1186_v54 = vmul.f32 %v1669_v18, %v2134_v19  ;;  %1678 = vrcp.f32 %v1132_v35  ;;  %v1142_v29 = vpop.xlane.xlu0 %1141 }
 0x410   :  { %1236 = vst [vmem:[%s2314_s3 + $0x98] sm:$0xff] %v1192_v60  ;;  %1680 = vrcp.f32 %v1142_v29 }
 0x411   :  { %v1671_v24 = vpop.eup %1670  ;;  %1233 = vst [vmem:[%s2314_s3 + $0x80] sm:$0xff] %v1186_v54 }
 0x412   :  { %v1673_v48 = vpop.eup %1672  ;;  %v1188_v25 = vmul.f32 %v1671_v24, %v2139_v62  ;;  %v1144_v3 = vpop.xlane.xlu1 %1143 }
 0x413   :  { %v1198_v59 = vmul.f32 %v1673_v48, %v2142_v30  ;;  %1682 = vrcp.f32 %v1144_v3  ;;  %v1138_v19 = vpop.xlane.xlu0 %1137 }
 0x414   :  { %1234 = vst [vmem:[%s2314_s3 + $0x88] sm:$0xff] %v1188_v25  ;;  %1684 = vrcp.f32 %v1138_v19 }
 0x415   :  { %v1675_v28 = vpop.eup %1674  ;;  %1239 = vst [vmem:[%s2314_s3 + $0xb0] sm:$0xff] %v1198_v59 }
 0x416   :  { %v1677_v58 = vpop.eup %1676  ;;  %v1200_v55 = vmul.f32 %v1675_v28, %v2147_v36  ;;  %v1140_v2 = vpop.xlane.xlu1 %1139 }
 0x417   :  { %v1194_v62 = vmul.f32 %v1677_v58, %v2149_v39  ;;  %1686 = vrcp.f32 %v1140_v2  ;;  %v1146_v30 = vpop.xlane.xlu0 %1145 }
 0x418   :  { %1240 = vst [vmem:[%s2314_s3 + $0xb8] sm:$0xff] %v1200_v55  ;;  %1688 = vrcp.f32 %v1146_v30 }
 0x419   :  { %v1679_v41 = vpop.eup %1678  ;;  %1237 = vst [vmem:[%s2314_s3 + $0xa0] sm:$0xff] %v1194_v62 }
 0x41a   :  { %v1681_v31 = vpop.eup %1680  ;;  %v1196_v33 = vmul.f32 %v1679_v41, %v2155_v45  ;;  %v1148_v7 = vpop.xlane.xlu1 %1147 }
 0x41b   :  { %v1206_v36 = vmul.f32 %v1681_v31, %v2157_v20  ;;  %1690 = vrcp.f32 %v1148_v7  ;;  %v1150_v39 = vpop.xlane.xlu0 %1149 }
 0x41c   :  { %1238 = vst [vmem:[%s2314_s3 + $0xa8] sm:$0xff] %v1196_v33  ;;  %1692 = vrcp.f32 %v1150_v39 }
 0x41d   :  { %v1683_v8 = vpop.eup %1682  ;;  %1243 = vst [vmem:[%s2314_s3 + $0xd0] sm:$0xff] %v1206_v36 }
 0x41e   :  { %v1685_v5 = vpop.eup %1684  ;;  %v1208_v16 = vmul.f32 %v1683_v8, %v2162_v50  ;;  %v1152_v6 = vpop.xlane.xlu1 %1151 }
 0x41f   :  { %v1202_v45 = vmul.f32 %v1685_v5, %v2164_v23  ;;  %1694 = vrcp.f32 %v1152_v6 }
 0x420   :  { %1244 = vst [vmem:[%s2314_s3 + $0xd8] sm:$0xff] %v1208_v16 }
 0x421   :  { %v1687_v20 = vpop.eup %1686  ;;  %1241 = vst [vmem:[%s2314_s3 + $0xc0] sm:$0xff] %v1202_v45 }
 0x422   :  { %v1689_v44 = vpop.eup %1688  ;;  %v1204_v34 = vmul.f32 %v1687_v20, %v2168_v13 }
 0x423   :  { %v1210_v22 = vmul.f32 %v1689_v44, %v2170_v53 }
 0x424   :  { %1242 = vst [vmem:[%s2314_s3 + $0xc8] sm:$0xff] %v1204_v34 }
 0x425   :  { %v1691_v50 = vpop.eup %1690  ;;  %1245 = vst [vmem:[%s2314_s3 + $0xe0] sm:$0xff] %v1210_v22 }
 0x426   :  { %v1693_v23 = vpop.eup %1692  ;;  %v1212_v0 = vmul.f32 %v1691_v50, %v2174_v15 }
 0x427   :  { %v1214_v42 = vmul.f32 %v1693_v23, %v2176_v38 }
 0x428   :  { %1246 = vst [vmem:[%s2314_s3 + $0xe8] sm:$0xff] %v1212_v0 }
 0x429   :  { %v1695_v13 = vpop.eup %1694  ;;  %1247 = vst [vmem:[%s2314_s3 + $0xf0] sm:$0xff] %v1214_v42 }
 0x42a   :  { %v1216_v53 = vmul.f32 %v1695_v13, %v2180_v56 }
 0x42c   :  { %1248 = vst [vmem:[%s2314_s3 + $0xf8] sm:$0xff] %v1216_v53 }

</bundles_post_ra>
